<compile_context>
chip_gen: v5e
topology: v5e:2x2
jax: 0.10.0
libtpu: 0.0.40
codegen_flags: <defaults>
</compile_context>

<pallas_src>
import jax
import jax.numpy as jnp
from jax.experimental import pallas as pl
from jax.experimental.pallas import tpu as pltpu


_HIDDEN = 128   # l1 = l2 = l3 = 128 in the PyTorch module
_LANE = 128
_EPS = 1e-5


def _round_up(x, m):
    return (x + m - 1) // m * m


def _layernorm(x, gamma, beta, eps=_EPS):
    # One-pass statistics: var = E[x^2] - E[x]^2 (clamped at 0). The two cross-lane
    # reductions are independent, breaking the serial mean -> centered-variance chain.
    inv_n = 1.0 / x.shape[-1]
    s = jnp.sum(x, axis=-1, keepdims=True)
    ss = jnp.sum(x * x, axis=-1, keepdims=True)
    mean = s * inv_n
    var = jnp.maximum(ss * inv_n - mean * mean, 0.0)
    inv = jax.lax.rsqrt(var + eps)
    return (x - mean) * inv * gamma + beta


def _elu(x):
    # ELU, alpha = 1 (torch.nn.functional.elu default). The negative branch needs
    # expm1(x); compute it cancellation-safely using only exp/mul/add/where (all
    # guaranteed Mosaic lowerings): Taylor series for small |x|, exp(x)-1 otherwise.
    xn = jnp.minimum(x, 0.0)
    em1_small = xn * (1.0 + xn * (0.5 + xn * (1.0 / 6.0 + xn * (1.0 / 24.0))))
    em1 = jnp.where(xn > -0.0625, em1_small, jnp.exp(xn) - 1.0)
    return jnp.where(x > 0.0, x, em1)


def master_policy_kernel(x_ref, w1_ref, w2_ref, w3_ref, vec_ref, o_ref):
    # vec_ref packs the seven small per-layer vectors into a single (8, 128) tile:
    #   row 0: b1   row 1: gamma1  row 2: beta1
    #   row 3: b2   row 4: gamma2  row 5: beta2
    #   row 6: b3 (zero-padded to 128 lanes)      row 7: unused
    vec = vec_ref[...]                       # f32, loaded once per grid step
    b1, g1, be1 = vec[0:1, :], vec[1:2, :], vec[2:3, :]
    b2, g2, be2 = vec[3:4, :], vec[4:5, :], vec[5:6, :]
    b3 = vec[6:7, :]

    mm_dtype = w1_ref.dtype                  # bf16 matmuls, f32 accumulation

    # layer 1: Linear -> LayerNorm -> ELU   (x already in matmul dtype; no re-cast)
    h = jnp.dot(x_ref[...], w1_ref[...], preferred_element_type=jnp.float32) + b1
    h = _elu(_layernorm(h, g1, be1))

    # layer 2: Linear -> LayerNorm -> ELU
    h = jnp.dot(h.astype(mm_dtype), w2_ref[...],
                preferred_element_type=jnp.float32) + b2
    h = _elu(_layernorm(h, g2, be2))

    # output head: lane-dense [TILE_B, 128] store; real columns sliced in the wrapper
    out = jnp.dot(h.astype(mm_dtype), w3_ref[...],
                  preferred_element_type=jnp.float32) + b3
    o_ref[...] = out.astype(o_ref.dtype)


def master_policy_forward(x, params, *, tile_b=512, matmul_dtype=jnp.bfloat16):
    """x: [B, state_dim] float32. params: dict of kernel-layout f32 weights."""
    B, state_dim = x.shape
    H = params["w1"].shape[1]
    action_dim = params["w3"].shape[1]
    assert H == _HIDDEN and params["w2"].shape == (H, H)
    assert action_dim <= _LANE, "packed-bias layout assumes action_dim <= 128"

    K1 = _round_up(state_dim, _LANE)            # padded contraction dim of layer 1
    NP = _LANE                                  # lane-dense output head width
    TILE_B = min(tile_b, _round_up(B, 16))      # 16-row multiple (bf16 sublane pack)
    B_pad = _round_up(B, TILE_B)

    # ---- host-side layout prep (zero-padding + dtype cast, done once) ----
    x_p = jnp.zeros((B_pad, K1), matmul_dtype).at[:B, :state_dim].set(
        x.astype(matmul_dtype))
    w1 = jnp.zeros((K1, H), matmul_dtype).at[:state_dim, :].set(
        params["w1"].astype(matmul_dtype))
    w2 = params["w2"].astype(matmul_dtype)
    w3 = jnp.zeros((H, NP), matmul_dtype).at[:, :action_dim].set(
        params["w3"].astype(matmul_dtype))

    vec = jnp.zeros((8, _LANE), jnp.float32)
    vec = vec.at[0, :].set(params["b1"].reshape(-1))
    vec = vec.at[1, :].set(params["g1"].reshape(-1))
    vec = vec.at[2, :].set(params["be1"].reshape(-1))
    vec = vec.at[3, :].set(params["b2"].reshape(-1))
    vec = vec.at[4, :].set(params["g2"].reshape(-1))
    vec = vec.at[5, :].set(params["be2"].reshape(-1))
    vec = vec.at[6, :action_dim].set(params["b3"].reshape(-1))

    out = pl.pallas_call(
        master_policy_kernel,
        out_shape=jax.ShapeDtypeStruct((B_pad, NP), jnp.float32),
        grid=(B_pad // TILE_B,),
        in_specs=[
            pl.BlockSpec((TILE_B, K1), lambda i: (i, 0)),   # activations: batch-tiled
            pl.BlockSpec((K1, H), lambda i: (0, 0)),        # weights: resident in VMEM
            pl.BlockSpec((H, H), lambda i: (0, 0)),
            pl.BlockSpec((H, NP), lambda i: (0, 0)),
            pl.BlockSpec((8, _LANE), lambda i: (0, 0)),     # packed bias/LN vectors
        ],
        out_specs=pl.BlockSpec((TILE_B, NP), lambda i: (i, 0)),
        compiler_params=pltpu.CompilerParams(
            dimension_semantics=("parallel",),              # megacore on v7x
        ),
    )(x_p, w1, w2, w3, vec)

    return out[:B, :action_dim]


def init_params(key, state_dim, action_dim, hidden=_HIDDEN):
    """Deterministic synthetic init (uniform, roughly matching nn.Linear scale)."""
    ks = jax.random.split(key, 6)

    def lin(kw, kb, fan_in, fan_out):
        bound = 1.0 / jnp.sqrt(fan_in)
        w = jax.random.uniform(kw, (fan_in, fan_out), jnp.float32, -bound, bound)
        b = jax.random.uniform(kb, (1, fan_out), jnp.float32, -bound, bound)
        return w, b

    w1, b1 = lin(ks[0], ks[1], state_dim, hidden)
    w2, b2 = lin(ks[2], ks[3], hidden, hidden)
    w3, b3 = lin(ks[4], ks[5], hidden, action_dim)
    return {
        "w1": w1, "b1": b1,
        "g1": jnp.ones((1, hidden), jnp.float32), "be1": jnp.zeros((1, hidden), jnp.float32),
        "w2": w2, "b2": b2,
        "g2": jnp.ones((1, hidden), jnp.float32), "be2": jnp.zeros((1, hidden), jnp.float32),
        "w3": w3, "b3": b3,
    }


def reference_forward(x, p, matmul_dtype=jnp.bfloat16):
    """Pure-JAX reference matching the PyTorch forward (same bf16 matmul casts)."""
    def ln(h, g, b, eps=_EPS):
        m = jnp.mean(h, -1, keepdims=True)
        v = jnp.mean((h - m) ** 2, -1, keepdims=True)
        return (h - m) * jax.lax.rsqrt(v + eps) * g + b

    def elu(h):
        return jnp.where(h > 0, h, jnp.expm1(jnp.minimum(h, 0.0)))

    def dot(a, w):
        return jnp.dot(a.astype(matmul_dtype), w.astype(matmul_dtype),
                       preferred_element_type=jnp.float32)

    h = elu(ln(dot(x, p["w1"]) + p["b1"], p["g1"], p["be1"]))
    h = elu(ln(dot(h, p["w2"]) + p["b2"], p["g2"], p["be2"]))
    return dot(h, p["w3"]) + p["b3"]


if __name__ == "__main__":
    key = jax.random.PRNGKey(0)
    k_x, k_p, k_x2 = jax.random.split(key, 3)

    # small demo shapes consistent with the module
    batch, state_dim, action_dim = 8, 16, 8
    x = jax.random.normal(k_x, (batch, state_dim), jnp.float32)
    params = init_params(k_p, state_dim, action_dim)

    out = jax.block_until_ready(master_policy_forward(x, params))
    ref = reference_forward(x, params)
    assert out.shape == (batch, action_dim)
    assert jnp.allclose(out, ref, atol=1e-2, rtol=1e-2), \
        float(jnp.max(jnp.abs(out - ref)))

    # second run: batch not a multiple of the tile -> exercises padding and grid > 1
    big_batch = 1200
    x_big = jax.random.normal(k_x2, (big_batch, state_dim), jnp.float32)
    out_big = jax.block_until_ready(master_policy_forward(x_big, params))
    ref_big = reference_forward(x_big, params)
    assert out_big.shape == (big_batch, action_dim)
    assert jnp.allclose(out_big, ref_big, atol=1e-2, rtol=1e-2), \
        float(jnp.max(jnp.abs(out_big - ref_big)))

    print("KERNEL_OK")
</pallas_src>

<mosaic_0001>
module attributes {stable_mosaic.version = 11 : i64} {
  func.func @master_policy_kernel(%arg0: i32, %arg1: memref<16x128xbf16, #tpu.memory_space<vmem>>, %arg2: memref<128x128xbf16, #tpu.memory_space<vmem>>, %arg3: memref<128x128xbf16, #tpu.memory_space<vmem>>, %arg4: memref<128x128xbf16, #tpu.memory_space<vmem>>, %arg5: memref<8x128xf32, #tpu.memory_space<vmem>>, %arg6: memref<16x128xf32, #tpu.memory_space<vmem>>) attributes {dimension_semantics = [#tpu.dimension_semantics<parallel>], iteration_bounds = array<i64: 1>, scalar_prefetch = 0 : i64, scratch_operands = 0 : i64, tpu.core_type = #tpu.core_type<tc>, window_params = [{transform_indices = @transform_0, window_bounds = array<i64: 16, 128>}, {pipeline_mode = #tpu.pipeline_mode<synchronous>, transform_indices = @transform_1, window_bounds = array<i64: 128, 128>}, {pipeline_mode = #tpu.pipeline_mode<synchronous>, transform_indices = @transform_2, window_bounds = array<i64: 128, 128>}, {pipeline_mode = #tpu.pipeline_mode<synchronous>, transform_indices = @transform_3, window_bounds = array<i64: 128, 128>}, {pipeline_mode = #tpu.pipeline_mode<synchronous>, transform_indices = @transform_4, window_bounds = array<i64: 8, 128>}, {transform_indices = @transform_5, window_bounds = array<i64: 16, 128>}]} {
    %c0 = arith.constant 0 : index
    %c0_0 = arith.constant 0 : index
    %0 = vector.load %arg5[%c0, %c0_0] : memref<8x128xf32, #tpu.memory_space<vmem>>, vector<8x128xf32>
    %1 = vector.extract_strided_slice %0 {offsets = [0, 0], sizes = [1, 128], strides = [1, 1]} : vector<8x128xf32> to vector<1x128xf32>
    %2 = vector.extract_strided_slice %0 {offsets = [1, 0], sizes = [1, 128], strides = [1, 1]} : vector<8x128xf32> to vector<1x128xf32>
    %3 = vector.extract_strided_slice %0 {offsets = [2, 0], sizes = [1, 128], strides = [1, 1]} : vector<8x128xf32> to vector<1x128xf32>
    %4 = vector.extract_strided_slice %0 {offsets = [3, 0], sizes = [1, 128], strides = [1, 1]} : vector<8x128xf32> to vector<1x128xf32>
    %5 = vector.extract_strided_slice %0 {offsets = [4, 0], sizes = [1, 128], strides = [1, 1]} : vector<8x128xf32> to vector<1x128xf32>
    %6 = vector.extract_strided_slice %0 {offsets = [5, 0], sizes = [1, 128], strides = [1, 1]} : vector<8x128xf32> to vector<1x128xf32>
    %7 = vector.extract_strided_slice %0 {offsets = [6, 0], sizes = [1, 128], strides = [1, 1]} : vector<8x128xf32> to vector<1x128xf32>
    %c0_1 = arith.constant 0 : index
    %c0_2 = arith.constant 0 : index
    %8 = vector.load %arg1[%c0_1, %c0_2] : memref<16x128xbf16, #tpu.memory_space<vmem>>, vector<16x128xbf16>
    %c0_3 = arith.constant 0 : index
    %c0_4 = arith.constant 0 : index
    %9 = vector.load %arg2[%c0_3, %c0_4] : memref<128x128xbf16, #tpu.memory_space<vmem>>, vector<128x128xbf16>
    %cst = arith.constant dense<0.000000e+00> : vector<16x128xf32>
    %10 = tpu.matmul %8, %9, %cst {dimension_numbers = #tpu.dot_dimension_numbers<[1], [0], [0], [1], [0, 0, 1, 1], [], []>} : vector<16x128xbf16>, vector<128x128xbf16>, vector<16x128xf32> -> vector<16x128xf32>
    %11 = vector.broadcast %1 : vector<1x128xf32> to vector<16x128xf32>
    %12 = arith.addf %10, %11 : vector<16x128xf32>
    %cst_5 = arith.constant dense<0.000000e+00> : vector<16xf32>
    %13 = vector.multi_reduction <add>, %12, %cst_5 [1] : vector<16x128xf32> to vector<16xf32>
    %14 = vector.shape_cast %13 : vector<16xf32> to vector<16x1xf32>
    %15 = arith.mulf %12, %12 : vector<16x128xf32>
    %cst_6 = arith.constant dense<0.000000e+00> : vector<16xf32>
    %16 = vector.multi_reduction <add>, %15, %cst_6 [1] : vector<16x128xf32> to vector<16xf32>
    %17 = vector.shape_cast %16 : vector<16xf32> to vector<16x1xf32>
    %cst_7 = arith.constant 7.812500e-03 : f32
    %18 = vector.broadcast %cst_7 : f32 to vector<16x1xf32>
    %19 = arith.mulf %14, %18 : vector<16x1xf32>
    %cst_8 = arith.constant 7.812500e-03 : f32
    %20 = vector.broadcast %cst_8 : f32 to vector<16x1xf32>
    %21 = arith.mulf %17, %20 : vector<16x1xf32>
    %22 = arith.mulf %19, %19 : vector<16x1xf32>
    %23 = arith.subf %21, %22 : vector<16x1xf32>
    %cst_9 = arith.constant 0.000000e+00 : f32
    %24 = vector.broadcast %cst_9 : f32 to vector<16x1xf32>
    %25 = arith.maximumf %23, %24 : vector<16x1xf32>
    %cst_10 = arith.constant 9.99999974E-6 : f32
    %26 = vector.broadcast %cst_10 : f32 to vector<16x1xf32>
    %27 = arith.addf %25, %26 : vector<16x1xf32>
    %28 = math.rsqrt %27 : vector<16x1xf32>
    %29 = vector.broadcast %19 : vector<16x1xf32> to vector<16x128xf32>
    %30 = arith.subf %12, %29 : vector<16x128xf32>
    %31 = vector.broadcast %28 : vector<16x1xf32> to vector<16x128xf32>
    %32 = arith.mulf %30, %31 : vector<16x128xf32>
    %33 = vector.broadcast %2 : vector<1x128xf32> to vector<16x128xf32>
    %34 = arith.mulf %32, %33 : vector<16x128xf32>
    %35 = vector.broadcast %3 : vector<1x128xf32> to vector<16x128xf32>
    %36 = arith.addf %34, %35 : vector<16x128xf32>
    %cst_11 = arith.constant 0.000000e+00 : f32
    %37 = vector.broadcast %cst_11 : f32 to vector<16x128xf32>
    %38 = arith.minimumf %36, %37 : vector<16x128xf32>
    %cst_12 = arith.constant 0.0416666679 : f32
    %39 = vector.broadcast %cst_12 : f32 to vector<16x128xf32>
    %40 = arith.mulf %38, %39 : vector<16x128xf32>
    %cst_13 = arith.constant 0.166666672 : f32
    %41 = vector.broadcast %cst_13 : f32 to vector<16x128xf32>
    %42 = arith.addf %41, %40 : vector<16x128xf32>
    %43 = arith.mulf %38, %42 : vector<16x128xf32>
    %cst_14 = arith.constant 5.000000e-01 : f32
    %44 = vector.broadcast %cst_14 : f32 to vector<16x128xf32>
    %45 = arith.addf %44, %43 : vector<16x128xf32>
    %46 = arith.mulf %38, %45 : vector<16x128xf32>
    %cst_15 = arith.constant 1.000000e+00 : f32
    %47 = vector.broadcast %cst_15 : f32 to vector<16x128xf32>
    %48 = arith.addf %47, %46 : vector<16x128xf32>
    %49 = arith.mulf %38, %48 : vector<16x128xf32>
    %cst_16 = arith.constant -6.250000e-02 : f32
    %50 = vector.broadcast %cst_16 : f32 to vector<16x128xf32>
    %51 = arith.cmpf ogt, %38, %50 : vector<16x128xf32>
    %52 = math.exp %38 : vector<16x128xf32>
    %cst_17 = arith.constant 1.000000e+00 : f32
    %53 = vector.broadcast %cst_17 : f32 to vector<16x128xf32>
    %54 = arith.subf %52, %53 : vector<16x128xf32>
    %55 = arith.select %51, %49, %54 : vector<16x128xi1>, vector<16x128xf32>
    %cst_18 = arith.constant 0.000000e+00 : f32
    %56 = vector.broadcast %cst_18 : f32 to vector<16x128xf32>
    %57 = arith.cmpf ogt, %36, %56 : vector<16x128xf32>
    %58 = arith.select %57, %36, %55 : vector<16x128xi1>, vector<16x128xf32>
    %59 = arith.truncf %58 : vector<16x128xf32> to vector<16x128xbf16>
    %c0_19 = arith.constant 0 : index
    %c0_20 = arith.constant 0 : index
    %60 = vector.load %arg3[%c0_19, %c0_20] : memref<128x128xbf16, #tpu.memory_space<vmem>>, vector<128x128xbf16>
    %cst_21 = arith.constant dense<0.000000e+00> : vector<16x128xf32>
    %61 = tpu.matmul %59, %60, %cst_21 {dimension_numbers = #tpu.dot_dimension_numbers<[1], [0], [0], [1], [0, 0, 1, 1], [], []>} : vector<16x128xbf16>, vector<128x128xbf16>, vector<16x128xf32> -> vector<16x128xf32>
    %62 = vector.broadcast %4 : vector<1x128xf32> to vector<16x128xf32>
    %63 = arith.addf %61, %62 : vector<16x128xf32>
    %cst_22 = arith.constant dense<0.000000e+00> : vector<16xf32>
    %64 = vector.multi_reduction <add>, %63, %cst_22 [1] : vector<16x128xf32> to vector<16xf32>
    %65 = vector.shape_cast %64 : vector<16xf32> to vector<16x1xf32>
    %66 = arith.mulf %63, %63 : vector<16x128xf32>
    %cst_23 = arith.constant dense<0.000000e+00> : vector<16xf32>
    %67 = vector.multi_reduction <add>, %66, %cst_23 [1] : vector<16x128xf32> to vector<16xf32>
    %68 = vector.shape_cast %67 : vector<16xf32> to vector<16x1xf32>
    %cst_24 = arith.constant 7.812500e-03 : f32
    %69 = vector.broadcast %cst_24 : f32 to vector<16x1xf32>
    %70 = arith.mulf %65, %69 : vector<16x1xf32>
    %cst_25 = arith.constant 7.812500e-03 : f32
    %71 = vector.broadcast %cst_25 : f32 to vector<16x1xf32>
    %72 = arith.mulf %68, %71 : vector<16x1xf32>
    %73 = arith.mulf %70, %70 : vector<16x1xf32>
    %74 = arith.subf %72, %73 : vector<16x1xf32>
    %cst_26 = arith.constant 0.000000e+00 : f32
    %75 = vector.broadcast %cst_26 : f32 to vector<16x1xf32>
    %76 = arith.maximumf %74, %75 : vector<16x1xf32>
    %cst_27 = arith.constant 9.99999974E-6 : f32
    %77 = vector.broadcast %cst_27 : f32 to vector<16x1xf32>
    %78 = arith.addf %76, %77 : vector<16x1xf32>
    %79 = math.rsqrt %78 : vector<16x1xf32>
    %80 = vector.broadcast %70 : vector<16x1xf32> to vector<16x128xf32>
    %81 = arith.subf %63, %80 : vector<16x128xf32>
    %82 = vector.broadcast %79 : vector<16x1xf32> to vector<16x128xf32>
    %83 = arith.mulf %81, %82 : vector<16x128xf32>
    %84 = vector.broadcast %5 : vector<1x128xf32> to vector<16x128xf32>
    %85 = arith.mulf %83, %84 : vector<16x128xf32>
    %86 = vector.broadcast %6 : vector<1x128xf32> to vector<16x128xf32>
    %87 = arith.addf %85, %86 : vector<16x128xf32>
    %cst_28 = arith.constant 0.000000e+00 : f32
    %88 = vector.broadcast %cst_28 : f32 to vector<16x128xf32>
    %89 = arith.minimumf %87, %88 : vector<16x128xf32>
    %cst_29 = arith.constant 0.0416666679 : f32
    %90 = vector.broadcast %cst_29 : f32 to vector<16x128xf32>
    %91 = arith.mulf %89, %90 : vector<16x128xf32>
    %cst_30 = arith.constant 0.166666672 : f32
    %92 = vector.broadcast %cst_30 : f32 to vector<16x128xf32>
    %93 = arith.addf %92, %91 : vector<16x128xf32>
    %94 = arith.mulf %89, %93 : vector<16x128xf32>
    %cst_31 = arith.constant 5.000000e-01 : f32
    %95 = vector.broadcast %cst_31 : f32 to vector<16x128xf32>
    %96 = arith.addf %95, %94 : vector<16x128xf32>
    %97 = arith.mulf %89, %96 : vector<16x128xf32>
    %cst_32 = arith.constant 1.000000e+00 : f32
    %98 = vector.broadcast %cst_32 : f32 to vector<16x128xf32>
    %99 = arith.addf %98, %97 : vector<16x128xf32>
    %100 = arith.mulf %89, %99 : vector<16x128xf32>
    %cst_33 = arith.constant -6.250000e-02 : f32
    %101 = vector.broadcast %cst_33 : f32 to vector<16x128xf32>
    %102 = arith.cmpf ogt, %89, %101 : vector<16x128xf32>
    %103 = math.exp %89 : vector<16x128xf32>
    %cst_34 = arith.constant 1.000000e+00 : f32
    %104 = vector.broadcast %cst_34 : f32 to vector<16x128xf32>
    %105 = arith.subf %103, %104 : vector<16x128xf32>
    %106 = arith.select %102, %100, %105 : vector<16x128xi1>, vector<16x128xf32>
    %cst_35 = arith.constant 0.000000e+00 : f32
    %107 = vector.broadcast %cst_35 : f32 to vector<16x128xf32>
    %108 = arith.cmpf ogt, %87, %107 : vector<16x128xf32>
    %109 = arith.select %108, %87, %106 : vector<16x128xi1>, vector<16x128xf32>
    %110 = arith.truncf %109 : vector<16x128xf32> to vector<16x128xbf16>
    %c0_36 = arith.constant 0 : index
    %c0_37 = arith.constant 0 : index
    %111 = vector.load %arg4[%c0_36, %c0_37] : memref<128x128xbf16, #tpu.memory_space<vmem>>, vector<128x128xbf16>
    %cst_38 = arith.constant dense<0.000000e+00> : vector<16x128xf32>
    %112 = tpu.matmul %110, %111, %cst_38 {dimension_numbers = #tpu.dot_dimension_numbers<[1], [0], [0], [1], [0, 0, 1, 1], [], []>} : vector<16x128xbf16>, vector<128x128xbf16>, vector<16x128xf32> -> vector<16x128xf32>
    %113 = vector.broadcast %7 : vector<1x128xf32> to vector<16x128xf32>
    %114 = arith.addf %112, %113 : vector<16x128xf32>
    %c0_39 = arith.constant 0 : index
    %c0_40 = arith.constant 0 : index
    %115 = vector.load %arg6[%c0_39, %c0_40] : memref<16x128xf32, #tpu.memory_space<vmem>>, vector<16x128xf32>
    tpu.vector_store %arg6[%c0_39, %c0_40], %114 {strides = array<i32>} : memref<16x128xf32, #tpu.memory_space<vmem>>, vector<16x128xf32>,
    return
  }
  func.func @transform_0(%arg0: i32) -> (i32, i32) {
    %c0_i32 = arith.constant 0 : i32
    %c0_i32_0 = arith.constant 0 : i32
    return %arg0, %c0_i32 : i32, i32
  }
  func.func @transform_1(%arg0: i32) -> (i32, i32) {
    %c0_i32 = arith.constant 0 : i32
    %c0_i32_0 = arith.constant 0 : i32
    %c0_i32_1 = arith.constant 0 : i32
    return %c0_i32, %c0_i32_0 : i32, i32
  }
  func.func @transform_2(%arg0: i32) -> (i32, i32) {
    %c0_i32 = arith.constant 0 : i32
    %c0_i32_0 = arith.constant 0 : i32
    %c0_i32_1 = arith.constant 0 : i32
    return %c0_i32, %c0_i32_0 : i32, i32
  }
  func.func @transform_3(%arg0: i32) -> (i32, i32) {
    %c0_i32 = arith.constant 0 : i32
    %c0_i32_0 = arith.constant 0 : i32
    %c0_i32_1 = arith.constant 0 : i32
    return %c0_i32, %c0_i32_0 : i32, i32
  }
  func.func @transform_4(%arg0: i32) -> (i32, i32) {
    %c0_i32 = arith.constant 0 : i32
    %c0_i32_0 = arith.constant 0 : i32
    %c0_i32_1 = arith.constant 0 : i32
    return %c0_i32, %c0_i32_0 : i32, i32
  }
  func.func @transform_5(%arg0: i32) -> (i32, i32) {
    %c0_i32 = arith.constant 0 : i32
    %c0_i32_0 = arith.constant 0 : i32
    return %arg0, %c0_i32 : i32, i32
  }
}

</mosaic_0001>

<bundles_post_ra>
// kernel: tpu_custom_call.1
= control target key start
LH: loop header
LB: loop body
LE: loop exit
PB: predicated region body
PF: predicated region fallthrough
CT: control target
= control target key end

     0   :  { %10 = vsyncpa [#allocation3], 0  ;;  %s918_s0 = inlined_call_operand.hbm [shape: bf16[16,128], index: 0, kind: input, shape index: {}]   ;;  %s919_s1 = inlined_call_operand.hbm [shape: bf16[128,128], index: 1, kind: input, shape index: {}]   ;;  %s920_s2 = inlined_call_operand.hbm [shape: bf16[128,128], index: 2, kind: input, shape index: {}]   ;;  %s921_s3 = inlined_call_operand.hbm [shape: bf16[128,128], index: 3, kind: input, shape index: {}]   ;;  %s922_s4 = inlined_call_operand.hbm [shape: f32[8,128], index: 4, kind: input, shape index: {}]   ;;  %s923_s5 = inlined_call_operand.hbm [shape: f32[16,128], index: 5, kind: output, shape index: {}]  }
   0x1   :  { %11 = vsyncpa [#allocation6], 0 }
   0x2   :  { %12 = vsyncpa [#allocation9], 0 }
   0x3   :  { %13 = vsyncpa [#allocation4], 0  ;;  %s31_s20 = sshll.u32 %s919_s1, 4  ;;  %s839_s21 = smov [#allocation5]   ;;  %s32_s20 = int_to_ptr.hbm [resolvable:$true] %s31_s20 }
   0x4   :  { %s33_s22 = sshll.u32 %s839_s21, 4  ;;  %s57_s25 = sshll.u32 %s921_s3, 4  ;;  %s34_s22 = int_to_ptr.vmem [resolvable:$true] %s33_s22  ;;  %s58_s25 = int_to_ptr.hbm [resolvable:$true] %s57_s25 }
   0x5   :  { %s840_s26 = smov 64   ;;  %s841_s27 = smov 4  }
   0x6   :  { %39 = dma.hbm_to_vmem [thread:$0]  %s32_s20, 1024, %s34_s22, [#allocation6], %s840_s26, %s840_s26, %s841_s27  }
   0x7   :  { %s842_s28 = smov [#allocation8]   ;;  %s18_s7 = sshll.u32 %s918_s0, 4  ;;  %s19_s7 = int_to_ptr.hbm [resolvable:$true] %s18_s7 }
   0x8   :  { %s59_s29 = sshll.u32 %s842_s28, 4  ;;  %s44_s9 = sshll.u32 %s920_s2, 4  ;;  %s60_s29 = int_to_ptr.vmem [resolvable:$true] %s59_s29  ;;  %s45_s9 = int_to_ptr.hbm [resolvable:$true] %s44_s9 }
   0x9   :  { %65 = dma.hbm_to_vmem [thread:$0]  %s58_s25, 1024, %s60_s29, [#allocation9], %s840_s26, %s840_s26, %s841_s27  }
   0xa   :  { %s843_s10 = smov [#allocation2]   ;;  %s844_s3 = smov [#allocation7]  }
   0xb   :  { %s20_s11 = sshll.u32 %s843_s10, 4  ;;  %s46_s12 = sshll.u32 %s844_s3, 4  ;;  %s21_s11 = int_to_ptr.vmem [resolvable:$true] %s20_s11  ;;  %s47_s12 = int_to_ptr.vmem [resolvable:$true] %s46_s12 }
   0xc   :  { %26 = dma.hbm_to_vmem [thread:$0]  %s19_s7, 128, %s21_s11, [#allocation3], %s840_s26, %s840_s26, %s841_s27  }
   0xd   :  { %s71_s15 = sshll.u32 %s922_s4, 4  ;;  %s845_s0 = smov [#allocation10]   ;;  %s72_s15 = int_to_ptr.hbm [resolvable:$true] %s71_s15 }
   0xe   :  { %52 = dma.hbm_to_vmem [thread:$0]  %s45_s9, 1024, %s47_s12, [#allocation6], %s840_s26, %s840_s26, %s841_s27  }
   0xf   :  { %s73_s16 = sshll.u32 %s845_s0, 4  ;;  %s74_s16 = int_to_ptr.vmem [resolvable:$true] %s73_s16 }
  0x10   :  { %76 = dma.hbm_to_vmem [thread:$0]  %s72_s15, 128, %s74_s16, [#allocation9]  }
  0x11   :  { %831 = dma.done.wait [#allocation3], 128  }
  0x12   :  { %832 = vsyncadd [#allocation3], 4294967168 }
  0x13   :  { %833 = dma.done.wait [#allocation6], 2048  }
  0x14   :  { %834 = vsyncadd [#allocation6], 4294965248 }
  0x15   :  { %835 = dma.done.wait [#allocation9], 1152  }
  0x16   :  { %836 = vsyncadd [#allocation9], 4294966144  ;;  %v644_v0 = vld [vmem:[#allocation5 + $0x38] sm:$0xff]  ;;  %v643_v1 = vld [vmem:[#allocation5 + $0x30] sm:$0xff]  ;;  %s846_s2 = smov [#allocation11]   ;;  %s517_s19 = sshll.u32 %s923_s5, 4  ;;  %s518_s19 = int_to_ptr.hbm [resolvable:$true] %s517_s19 }
  0x17   :  { %171 = vmatpush.bf16.msra.mxu0 %v644_v0  ;;  %v642_v2 = vld [vmem:[#allocation5 + $0x28] sm:$0xff]  ;;  %v641_v3 = vld [vmem:[#allocation5 + $0x20] sm:$0xff]  ;;  %v640_v4 = vld [vmem:[#allocation5 + $0x18] sm:$0xff]  ;;  %s515_s4 = sshll.u32 %s846_s2, 4  ;;  %s847_s20 = smov 128   ;;  %s516_s4 = int_to_ptr.vmem [resolvable:$true] %s515_s4 }
  0x18   :  { %v639_v5 = vld [vmem:[#allocation5 + $0x10] sm:$0xff]  ;;  %v638_v6 = vld [vmem:[#allocation5 + $0x8] sm:$0xff]  ;;  %v637_v7 = vld [vmem:[#allocation5] sm:$0xff]  ;;  %s848_s21 = smov 8  }
  0x19   :  { %v636_v8 = vld [vmem:[#allocation2] sm:$0xff]  ;;  %v894_v9 = vld [vmem:[#allocation10] sm:$0xff]  ;;  %v651_v23 = vld [vmem:[#allocation7 + $0x30] sm:$0xff] }
  0x1a   :  { %v116_v10 = vperm.slane %v894_v9, 0  ;;  %v652_v17 = vld [vmem:[#allocation7 + $0x38] sm:$0xff]  ;;  %v650_v25 = vld [vmem:[#allocation7 + $0x28] sm:$0xff]  ;;  %v649_v30 = vld [vmem:[#allocation7 + $0x20] sm:$0xff]  ;;  %v231_v50 = vperm.slane %v894_v9, 1  ;;  %v234_v54 = vperm.slane %v894_v9, 2 }
  0x1b   :  { %172 = vmatpush.bf16.msra.mxu0 %v643_v1  ;;  %333 = vmatpush.bf16.msra.mxu1 %v652_v17  ;;  %v648_v34 = vld [vmem:[#allocation7 + $0x18] sm:$0xff]  ;;  %v647_v38 = vld [vmem:[#allocation7 + $0x10] sm:$0xff]  ;;  %v646_v42 = vld [vmem:[#allocation7 + $0x8] sm:$0xff] }
  0x1c   :  { %v645_v45 = vld [vmem:[#allocation7] sm:$0xff] }
  0x1f   :  { %173 = vmatpush.bf16.msra.mxu0 %v642_v2  ;;  %334 = vmatpush.bf16.msra.mxu1 %v651_v23 }
  0x23   :  { %174 = vmatpush.bf16.msra.mxu0 %v641_v3  ;;  %335 = vmatpush.bf16.msra.mxu1 %v650_v25 }
  0x27   :  { %175 = vmatpush.bf16.msra.mxu0 %v640_v4  ;;  %336 = vmatpush.bf16.msra.mxu1 %v649_v30 }
  0x2b   :  { %176 = vmatpush.bf16.msra.mxu0 %v639_v5  ;;  %337 = vmatpush.bf16.msra.mxu1 %v648_v34 }
  0x2f   :  { %177 = vmatpush.bf16.msra.mxu0 %v638_v6  ;;  %338 = vmatpush.bf16.msra.mxu1 %v647_v38 }
  0x33   :  { %178 = vmatpush.bf16.msra.mxu0 %v637_v7  ;;  %339 = vmatpush.bf16.msra.mxu1 %v646_v42  ;;  %v659_v42 = vld [vmem:[#allocation8 + $0x30] sm:$0xff] }
  0x36   :  { %179 = vmatmul.bf16.vlgmr.msra.gmra.mxu0 %v636_v8 }
  0x37   :  { %340 = vmatpush.bf16.msra.mxu1 %v645_v45 }
  0xb3   :  { %v180_v11 = vpop.f32.mrf.mxu0 }
  0xb4   :  { %v181_v12 = vadd.f32 %v180_v11, %v116_v10 }
  0xb6   :  { %185 = vadd.xlane.f32.xlu0 %v181_v12  ;;  %v189_v13 = vmul.f32 %v181_v12, %v181_v12 }
  0xb8   :  { %191 = vadd.xlane.f32.xlu1 %v189_v13 }
  0xbb   :  { %v182_v14 = vpop.f32.mrf.mxu0 }
  0xbc   :  { %v897_v15 = vadd.f32 %v182_v14, %v116_v10 }
  0xbe   :  { %187 = vadd.xlane.f32.xlu0 %v897_v15  ;;  %v190_v16 = vmul.f32 %v897_v15, %v897_v15 }
  0xc0   :  { %193 = vadd.xlane.f32.xlu1 %v190_v16 }
 0x129   :  { %v186_v18 = vpop.xlane.xlu0 %185 }
 0x12a   :  { %v195_v19 = vmul.f32 0.0078125, %v186_v18 }
 0x12b   :  { %v192_v20 = vpop.xlane.xlu1 %191 }
 0x12c   :  { %v199_v21 = vmul.f32 %v195_v19, %v195_v19  ;;  %v197_v22 = vmul.f32 0.0078125, %v192_v20  ;;  %v227_v48 = vsub.f32 %v181_v12, %v195_v19 }
 0x12e   :  { %v201_v24 = vsub.f32 %v197_v22, %v199_v21 }
 0x130   :  { %v203_v26 = vmax.f32 %v201_v24, 0.0 }
 0x131   :  { %v188_v27 = vpop.xlane.xlu0 %187 }
 0x132   :  { %v205_v28 = vadd.f32 1e-05, %v203_v26  ;;  %v196_v29 = vmul.f32 0.0078125, %v188_v27 }
 0x133   :  { %v194_v31 = vpop.xlane.xlu1 %193 }
 0x134   :  { %671 = vrsqrt.f32 %v205_v28  ;;  %v200_v32 = vmul.f32 %v196_v29, %v196_v29  ;;  %v198_v33 = vmul.f32 0.0078125, %v194_v31  ;;  %vm213_vm1 = vweird.f32 %v205_v28 }
 0x135   :  { %v228_v61 = vsub.f32 %v897_v15, %v196_v29  ;;  %v284_v29 = vperm.slane %v894_v9, 3 }
 0x136   :  { %v202_v35 = vsub.f32 %v198_v33, %v200_v32 }
 0x138   :  { %v204_v36 = vmax.f32 %v202_v35, 0.0 }
 0x13a   :  { %v672_v37 = vpop.eup %671  ;;  %v206_v40 = vadd.f32 1e-05, %v204_v36  ;;  %v660_v36 = vld [vmem:[#allocation8 + $0x38] sm:$0xff] }
 0x13b   :  { %v208_v39 = vmul.f32 %v672_v37, %v205_v28  ;;  %vm214_vm0 = vweird.f32 %v672_v37  ;;  %495 = vmatpush.bf16.msra.mxu2 %v660_v36 }
 0x13c   :  { %673 = vrsqrt.f32 %v206_v40  ;;  %vm215_vm2 = vmor %vm213_vm1, %vm214_vm0  ;;  %vm223_vm4 = vweird.f32 %v206_v40 }
 0x13d   :  { %v209_v41 = vmul.f32 %v672_v37, %v208_v39 }
 0x13f   :  { %v210_v43 = vmul.f32 0.5, %v209_v41  ;;  %496 = vmatpush.bf16.msra.mxu2 %v659_v42 }
 0x141   :  { %v211_v44 = vsub.f32 1.5, %v210_v43 }
 0x142   :  { %v674_v46 = vpop.eup %673 }
 0x143   :  { %v212_v47 = vmul.f32 %v672_v37, %v211_v44  ;;  %v218_v49 = vmul.f32 %v674_v46, %v206_v40  ;;  %vm224_vm3 = vweird.f32 %v674_v46  ;;  %v658_v44 = vld [vmem:[#allocation8 + $0x28] sm:$0xff] }
 0x144   :  { %vm225_vm5 = vmor %vm223_vm4, %vm224_vm3  ;;  %497 = vmatpush.bf16.msra.mxu2 %v658_v44 }
 0x145   :  { %v216_v51 = vsel %vm215_vm2, %v672_v37, %v212_v47  ;;  %v219_v52 = vmul.f32 %v674_v46, %v218_v49  ;;  %v657_v49 = vld [vmem:[#allocation8 + $0x20] sm:$0xff] }
 0x146   :  { %v229_v53 = vmul.f32 %v227_v48, %v216_v51 }
 0x147   :  { %v220_v55 = vmul.f32 0.5, %v219_v52 }
 0x148   :  { %v232_v56 = vmul.f32 %v231_v50, %v229_v53  ;;  %498 = vmatpush.bf16.msra.mxu2 %v657_v49  ;;  %v656_v53 = vld [vmem:[#allocation8 + $0x18] sm:$0xff] }
 0x149   :  { %v221_v57 = vsub.f32 1.5, %v220_v55 }
 0x14a   :  { %v235_v58 = vadd.f32 %v234_v54, %v232_v56 }
 0x14b   :  { %v222_v59 = vmul.f32 %v674_v46, %v221_v57  ;;  %v655_v57 = vld [vmem:[#allocation8 + $0x10] sm:$0xff] }
 0x14c   :  { %v237_v60 = vmin.f32 %v235_v58, 0.0  ;;  %vm263_vm8 = vcmp.gt.f32.partialorder %v235_v58, 0.0  ;;  %499 = vmatpush.bf16.msra.mxu2 %v656_v53 }
 0x14d   :  { %v226_v62 = vsel %vm225_vm5, %v674_v46, %v222_v59 }
 0x14e   :  { %v239_v63 = vmul.f32 0.041666668, %v237_v60  ;;  %v230_v0 = vmul.f32 %v228_v61, %v226_v62  ;;  %v255_v6 = vmul.f32 1.442695, %v237_v60  ;;  %vm253_vm6 = vcmp.gt.f32.partialorder %v237_v60, -0.0625  ;;  %v654_v61 = vld [vmem:[#allocation8 + $0x8] sm:$0xff] }
 0x150   :  { %v241_v1 = vadd.f32 0.16666667, %v239_v63  ;;  %v233_v2 = vmul.f32 %v231_v50, %v230_v0  ;;  %675 = vpow2.f32 %v255_v6  ;;  %500 = vmatpush.bf16.msra.mxu2 %v655_v57  ;;  %v653_v0 = vld [vmem:[#allocation8] sm:$0xff] }
 0x152   :  { %v243_v3 = vmul.f32 %v241_v1, %v237_v60  ;;  %v236_v4 = vadd.f32 %v234_v54, %v233_v2 }
 0x154   :  { %v245_v5 = vadd.f32 0.5, %v243_v3  ;;  %v238_v7 = vmin.f32 %v236_v4, 0.0  ;;  %vm264_vm9 = vcmp.gt.f32.partialorder %v236_v4, 0.0  ;;  %501 = vmatpush.bf16.msra.mxu2 %v654_v61 }
 0x156   :  { %v240_v8 = vmul.f32 0.041666668, %v238_v7  ;;  %v247_v10 = vmul.f32 %v245_v5, %v237_v60  ;;  %v257_v11 = vmul.f32 1.442695, %v238_v7  ;;  %v676_v16 = vpop.eup %675  ;;  %vm254_vm7 = vcmp.gt.f32.partialorder %v238_v7, -0.0625 }
 0x157   :  { %v568_v21 = vadd.f32 -1.0, %v676_v16  ;;  %v393_v5 = vperm.slane %v894_v9, 4 }
 0x158   :  { %v242_v12 = vadd.f32 0.16666667, %v240_v8  ;;  %677 = vpow2.f32 %v257_v11  ;;  %v249_v14 = vadd.f32 1.0, %v247_v10  ;;  %502 = vmatpush.bf16.msra.mxu2 %v653_v0  ;;  %v396_v10 = vperm.slane %v894_v9, 5 }
 0x15a   :  { %v244_v13 = vmul.f32 %v242_v12, %v238_v7  ;;  %v251_v18 = vmul.f32 %v249_v14, %v237_v60 }
 0x15c   :  { %v246_v15 = vadd.f32 0.5, %v244_v13  ;;  %v261_v24 = vsel %vm253_vm6, %v251_v18, %v568_v21 }
 0x15d   :  { %v265_v26 = vsel %vm263_vm8, %v235_v58, %v261_v24 }
 0x15e   :  { %v248_v17 = vmul.f32 %v246_v15, %v238_v7  ;;  %v678_v19 = vpop.eup %677 }
 0x15f   :  { %v569_v23 = vadd.f32 -1.0, %v678_v19 }
 0x160   :  { %v250_v20 = vadd.f32 1.0, %v248_v17 }
 0x162   :  { %v252_v22 = vmul.f32 %v250_v20, %v238_v7 }
 0x164   :  { %v262_v25 = vsel %vm254_vm7, %v252_v22, %v569_v23 }
 0x165   :  { %v266_v27 = vsel %vm264_vm9, %v236_v4, %v262_v25 }
 0x166   :  { %v267_v28 = vpack.c.bf16 %v266_v27, %v265_v26 }
 0x168   :  { %341 = vmatmul.bf16.vlgmr.msra.gmra.mxu1 %v267_v28 }
 0x1e5   :  { %v342_v30 = vpop.f32.mrf.mxu1 }
 0x1e6   :  { %v343_v31 = vadd.f32 %v342_v30, %v284_v29 }
 0x1e8   :  { %347 = vadd.xlane.f32.xlu2 %v343_v31  ;;  %v351_v32 = vmul.f32 %v343_v31, %v343_v31 }
 0x1ea   :  { %353 = vadd.xlane.f32.xlu0 %v351_v32 }
 0x1ed   :  { %v344_v33 = vpop.f32.mrf.mxu1 }
 0x1ee   :  { %v906_v34 = vadd.f32 %v344_v33, %v284_v29 }
 0x1f0   :  { %349 = vadd.xlane.f32.xlu2 %v906_v34  ;;  %v352_v35 = vmul.f32 %v906_v34, %v906_v34 }
 0x1f2   :  { %355 = vadd.xlane.f32.xlu1 %v352_v35 }
 0x25b   :  { %v348_v37 = vpop.xlane.xlu2 %347 }
 0x25c   :  { %v357_v38 = vmul.f32 0.0078125, %v348_v37 }
 0x25d   :  { %v354_v39 = vpop.xlane.xlu0 %353 }
 0x25e   :  { %v361_v40 = vmul.f32 %v357_v38, %v357_v38  ;;  %v359_v41 = vmul.f32 0.0078125, %v354_v39  ;;  %v389_v3 = vsub.f32 %v343_v31, %v357_v38 }
 0x260   :  { %v363_v43 = vsub.f32 %v359_v41, %v361_v40 }
 0x262   :  { %v365_v45 = vmax.f32 %v363_v43, 0.0 }
 0x263   :  { %v350_v46 = vpop.xlane.xlu2 %349 }
 0x264   :  { %v367_v47 = vadd.f32 1e-05, %v365_v45  ;;  %v358_v48 = vmul.f32 0.0078125, %v350_v46 }
 0x265   :  { %v356_v50 = vpop.xlane.xlu1 %355 }
 0x266   :  { %679 = vrsqrt.f32 %v367_v47  ;;  %v362_v51 = vmul.f32 %v358_v48, %v358_v48  ;;  %v360_v52 = vmul.f32 0.0078125, %v356_v50  ;;  %vm375_vm11 = vweird.f32 %v367_v47 }
 0x267   :  { %v390_v17 = vsub.f32 %v906_v34, %v358_v48  ;;  %v446_v48 = vperm.slane %v894_v9, 6 }
 0x268   :  { %v364_v54 = vsub.f32 %v360_v52, %v362_v51 }
 0x26a   :  { %v366_v55 = vmax.f32 %v364_v54, 0.0 }
 0x26c   :  { %v680_v56 = vpop.eup %679  ;;  %v368_v59 = vadd.f32 1e-05, %v366_v55 }
 0x26d   :  { %v370_v58 = vmul.f32 %v680_v56, %v367_v47  ;;  %vm376_vm10 = vweird.f32 %v680_v56 }
 0x26e   :  { %681 = vrsqrt.f32 %v368_v59  ;;  %vm377_vm12 = vmor %vm375_vm11, %vm376_vm10  ;;  %vm385_vm14 = vweird.f32 %v368_v59 }
 0x26f   :  { %v371_v60 = vmul.f32 %v680_v56, %v370_v58 }
 0x271   :  { %v372_v62 = vmul.f32 0.5, %v371_v60 }
 0x273   :  { %v373_v63 = vsub.f32 1.5, %v372_v62 }
 0x274   :  { %v682_v1 = vpop.eup %681 }
 0x275   :  { %v374_v2 = vmul.f32 %v680_v56, %v373_v63  ;;  %v380_v4 = vmul.f32 %v682_v1, %v368_v59  ;;  %vm386_vm13 = vweird.f32 %v682_v1 }
 0x276   :  { %vm387_vm15 = vmor %vm385_vm14, %vm386_vm13 }
 0x277   :  { %v378_v6 = vsel %vm377_vm12, %v680_v56, %v374_v2  ;;  %v381_v7 = vmul.f32 %v682_v1, %v380_v4 }
 0x278   :  { %v391_v8 = vmul.f32 %v389_v3, %v378_v6 }
 0x279   :  { %v382_v11 = vmul.f32 0.5, %v381_v7 }
 0x27a   :  { %v394_v12 = vmul.f32 %v393_v5, %v391_v8 }
 0x27b   :  { %v383_v13 = vsub.f32 1.5, %v382_v11 }
 0x27c   :  { %v397_v14 = vadd.f32 %v396_v10, %v394_v12 }
 0x27d   :  { %v384_v15 = vmul.f32 %v682_v1, %v383_v13 }
 0x27e   :  { %v399_v16 = vmin.f32 %v397_v14, 0.0  ;;  %vm425_vm2 = vcmp.gt.f32.partialorder %v397_v14, 0.0 }
 0x27f   :  { %v388_v18 = vsel %vm387_vm15, %v682_v1, %v384_v15 }
 0x280   :  { %v401_v19 = vmul.f32 0.041666668, %v399_v16  ;;  %v392_v20 = vmul.f32 %v390_v17, %v388_v18  ;;  %v417_v26 = vmul.f32 1.442695, %v399_v16  ;;  %vm415_vm0 = vcmp.gt.f32.partialorder %v399_v16, -0.0625 }
 0x282   :  { %v403_v21 = vadd.f32 0.16666667, %v401_v19  ;;  %v395_v22 = vmul.f32 %v393_v5, %v392_v20  ;;  %683 = vpow2.f32 %v417_v26 }
 0x284   :  { %v405_v23 = vmul.f32 %v403_v21, %v399_v16  ;;  %v398_v24 = vadd.f32 %v396_v10, %v395_v22 }
 0x286   :  { %v407_v25 = vadd.f32 0.5, %v405_v23  ;;  %v400_v27 = vmin.f32 %v398_v24, 0.0  ;;  %vm426_vm3 = vcmp.gt.f32.partialorder %v398_v24, 0.0 }
 0x288   :  { %v402_v28 = vmul.f32 0.041666668, %v400_v27  ;;  %v409_v29 = vmul.f32 %v407_v25, %v399_v16  ;;  %v419_v30 = vmul.f32 1.442695, %v400_v27  ;;  %v684_v35 = vpop.eup %683  ;;  %vm416_vm1 = vcmp.gt.f32.partialorder %v400_v27, -0.0625 }
 0x289   :  { %v602_v40 = vadd.f32 -1.0, %v684_v35 }
 0x28a   :  { %v404_v31 = vadd.f32 0.16666667, %v402_v28  ;;  %685 = vpow2.f32 %v419_v30  ;;  %v411_v33 = vadd.f32 1.0, %v409_v29 }
 0x28c   :  { %v406_v32 = vmul.f32 %v404_v31, %v400_v27  ;;  %v413_v37 = vmul.f32 %v411_v33, %v399_v16 }
 0x28e   :  { %v408_v34 = vadd.f32 0.5, %v406_v32  ;;  %v423_v43 = vsel %vm415_vm0, %v413_v37, %v602_v40 }
 0x28f   :  { %v427_v45 = vsel %vm425_vm2, %v397_v14, %v423_v43 }
 0x290   :  { %v410_v36 = vmul.f32 %v408_v34, %v400_v27  ;;  %v686_v38 = vpop.eup %685 }
 0x291   :  { %v603_v42 = vadd.f32 -1.0, %v686_v38 }
 0x292   :  { %v412_v39 = vadd.f32 1.0, %v410_v36 }
 0x294   :  { %v414_v41 = vmul.f32 %v412_v39, %v400_v27 }
 0x296   :  { %v424_v44 = vsel %vm416_vm1, %v414_v41, %v603_v42 }
 0x297   :  { %v428_v46 = vsel %vm426_vm3, %v398_v24, %v424_v44 }
 0x298   :  { %v429_v47 = vpack.c.bf16 %v428_v46, %v427_v45 }
 0x29a   :  { %503 = vmatmul.bf16.vlgmr.msra.gmra.mxu2 %v429_v47 }
 0x31d   :  { %v504_v49 = vpop.f32.mrf.mxu2 }
 0x31e   :  { %v505_v50 = vadd.f32 %v504_v49, %v446_v48 }
 0x320   :  { %509 = vst [vmem:[#allocation11] sm:$0xff] %v505_v50 }
 0x325   :  { %v506_v51 = vpop.f32.mrf.mxu2 }
 0x326   :  { %v507_v52 = vadd.f32 %v506_v51, %v446_v48 }
 0x328   :  { %510 = vst [vmem:[#allocation11 + $0x8] sm:$0xff] %v507_v52 }
 0x329   :  { %523 = dma.vmem_to_hbm [thread:$0]  %s516_s4, 256, %s518_s19, [#allocation4], %s847_s20, %s847_s20, %s848_s21  }
 0x32a   :  { %837 = dma.done.wait [#allocation4], 256  }
 0x32b   :  { %838 = vsyncadd [#allocation4], 4294967040 }
 0x32c   :  { %528 = vsyncpa [#allocation3], 1 }
 0x32d   :  { %529 = vsyncpa [#allocation6], 1 }
 0x32e   :  { %530 = vsyncpa [#allocation9], 1 }
 0x32f   :  { %531 = vsyncpa [#allocation4], 1 }

</bundles_post_ra>
